<compile_context>
chip_gen: v5e
topology: v5e:2x2
jax: 0.10.0
libtpu: 0.0.40
codegen_flags: <defaults>
</compile_context>

<pallas_src>
import functools

import jax
import jax.numpy as jnp
from jax import lax
from jax.experimental import pallas as pl
from jax.experimental.pallas import tpu as pltpu


def _sepconv_kernel(x_ref, dwf_ref, mask_ref, pw_ref, bias_ref, o_ref, pad_ref,
                    *, kernel_size, dilation, w, hw, lpad, use_mxu):
    """One batch element per grid step.  Everything is channels-major, spatial-flat.

    x_ref:    (1, C, H*W)        input image, flattened spatial on lanes
    dwf_ref:  (K*K, C, 1)        depthwise weights with BN scale folded in
    mask_ref: (K, 1, H*W)        column-validity mask per horizontal tap (0/1 f32)
    pw_ref:   (C_out, C)         pointwise (1x1 conv) weights
    bias_ref: (C_out, 1)         BN shift pushed through the pointwise conv
    o_ref:    (1, C_out, H*W)    lane-dense output
    pad_ref:  (C, H*W + halo)    VMEM scratch holding the zero-padded flat image
    """
    c = x_ref.shape[1]
    c_out = o_ref.shape[1]

    # Build the zero-padded flat image in VMEM (replaces wrapper-side jnp.pad).
    pad_ref[...] = jnp.zeros_like(pad_ref)
    pad_ref[:, lpad:lpad + hw] = x_ref[0].astype(jnp.float32)

    # Depthwise conv (VPU): K*K statically lane-shifted taps.
    # Vertical out-of-range taps land in the zero pad strips; horizontal row-wrap
    # positions are zeroed by the per-kw column mask.
    acc = jnp.zeros((c, hw), jnp.float32)
    for kh in range(kernel_size):
        for kw in range(kernel_size):
            start = (kh * w + kw) * dilation
            tap = pad_ref[:, start:start + hw]             # (C, HW)
            wvec = dwf_ref[kh * kernel_size + kw]          # (C, 1)  per-channel weight
            m = mask_ref[kw]                               # (1, HW) column validity
            acc = acc + (tap * wvec) * m

    # Pointwise 1x1 conv + folded-BN bias.
    if use_mxu:
        # Production channel counts: lane-dense (C_out,C)@(C,HW) on the MXU.
        # TODO(synk): cast operands to bf16 (keep f32 accumulation) for v6e/v7x MXU rate.
        out = jnp.dot(pw_ref[...], acc, preferred_element_type=jnp.float32)
    else:
        # Tiny channel counts: C outer-product FMAs on the VPU (MXU would be idle).
        out = jnp.zeros((c_out, hw), jnp.float32)
        for cc in range(c):
            out = out + pw_ref[:, cc:cc + 1] * acc[cc:cc + 1, :]
    out = out + bias_ref[...]
    o_ref[0] = out.astype(o_ref.dtype)


def separable_conv2d(x_nchw, dw_w, gamma, beta, run_mean, run_var, pw_w,
                     *, kernel_size=3, dilation=1, eps=1e-5):
    """x_nchw: (N, C, H, W);  dw_w: (C, K, K)  (PyTorch conv1.weight squeezed);
    pw_w: (C_out, C)  (PyTorch pointwise.weight squeezed).  stride == 1.
    Returns NCHW output, matching the PyTorch module (inference-mode BN)."""
    # TODO(synk): stride > 1 not implemented (module default stride=1).
    n, c, h, w = x_nchw.shape
    c_out = pw_w.shape[0]
    keff = kernel_size + (kernel_size - 1) * (dilation - 1)
    pad_total = keff - 1
    pb = pad_total // 2
    pe = pad_total - pb
    hw = h * w
    lpad = pb * w + pb
    rpad = pe * w + pe
    padded_len = hw + lpad + rpad

    f32 = jnp.float32
    # Fold BN (inference) into the conv weights.
    inv_std = 1.0 / jnp.sqrt(run_var.astype(f32) + eps)
    scale = gamma.astype(f32) * inv_std                         # (C,)
    shift = beta.astype(f32) - run_mean.astype(f32) * scale     # (C,)

    dwf = dw_w.astype(f32) * scale[:, None, None]               # (C, K, K)
    dwf = jnp.transpose(dwf, (1, 2, 0)).reshape(kernel_size * kernel_size, c)[:, :, None]

    bias = (pw_w.astype(f32) @ shift)[:, None]                  # (C_out, 1)

    # Column-validity masks (row-independent) for the horizontal taps.
    col = jnp.arange(hw, dtype=jnp.int32) % w                   # (HW,)
    kw_off = jnp.arange(kernel_size, dtype=jnp.int32) * dilation - pb
    cm = ((col[None, :] + kw_off[:, None] >= 0) &
          (col[None, :] + kw_off[:, None] < w)).astype(f32)     # (K, HW)
    colmask = cm[:, None, :]                                    # (K, 1, HW)

    x_flat = x_nchw.reshape(n, c, hw)                           # contiguous -> free

    kern = functools.partial(
        _sepconv_kernel, kernel_size=kernel_size, dilation=dilation,
        w=w, hw=hw, lpad=lpad, use_mxu=(c >= 128 and c_out >= 128))

    # NOTE: for production H,W,C add a row-strip grid axis and set vmem_limit_bytes
    # (v7x has only 64 MiB VMEM per TC); at these demo shapes everything fits easily.
    out = pl.pallas_call(
        kern,
        out_shape=jax.ShapeDtypeStruct((n, c_out, hw), x_nchw.dtype),
        grid=(n,),
        in_specs=[
            pl.BlockSpec((1, c, hw), lambda i: (i, 0, 0)),
            pl.BlockSpec((kernel_size * kernel_size, c, 1), lambda i: (0, 0, 0)),
            pl.BlockSpec((kernel_size, 1, hw), lambda i: (0, 0, 0)),
            pl.BlockSpec((c_out, c), lambda i: (0, 0)),
            pl.BlockSpec((c_out, 1), lambda i: (0, 0)),
        ],
        out_specs=pl.BlockSpec((1, c_out, hw), lambda i: (i, 0, 0)),
        scratch_shapes=[pltpu.VMEM((c, padded_len), jnp.float32)],
        compiler_params=pltpu.CompilerParams(dimension_semantics=("parallel",)),
    )(x_flat, dwf, colmask, pw_w.astype(f32), bias)

    return out.reshape(n, c_out, h, w)


def _reference(x_nchw, dw_w, gamma, beta, run_mean, run_var, pw_w,
               *, kernel_size=3, dilation=1, eps=1e-5):
    """Pure-JAX reference via lax.conv_general_dilated (NCHW, like PyTorch)."""
    n, c, h, w = x_nchw.shape
    keff = kernel_size + (kernel_size - 1) * (dilation - 1)
    pad_total = keff - 1
    pb = pad_total // 2
    pe = pad_total - pb
    xp = jnp.pad(x_nchw, ((0, 0), (0, 0), (pb, pe), (pb, pe)))
    y = lax.conv_general_dilated(
        xp, dw_w[:, None, :, :], window_strides=(1, 1), padding='VALID',
        rhs_dilation=(dilation, dilation), feature_group_count=c,
        dimension_numbers=('NCHW', 'OIHW', 'NCHW'))
    inv_std = 1.0 / jnp.sqrt(run_var + eps)
    y = (y - run_mean[None, :, None, None]) * inv_std[None, :, None, None]
    y = y * gamma[None, :, None, None] + beta[None, :, None, None]
    y = lax.conv_general_dilated(
        y, pw_w[:, :, None, None], window_strides=(1, 1), padding='VALID',
        dimension_numbers=('NCHW', 'OIHW', 'NCHW'))
    return y


if __name__ == "__main__":
    # Module config: SeparableConv2d(in_channels=4, out_channels=8, kernel_size=3,
    #                                stride=1, dilation=1, bias=False, norm_layer=BatchNorm2d)
    N, C_in, C_out, H, W = 2, 4, 8, 16, 16
    K, DIL = 3, 1

    key = jax.random.PRNGKey(0)
    k_x, k_dw, k_pw, k_g, k_b, k_m, k_v = jax.random.split(key, 7)

    x = jax.random.normal(k_x, (N, C_in, H, W), dtype=jnp.float32)
    # depthwise conv weight: PyTorch shape (C_in, 1, K, K) -> stored here as (C_in, K, K)
    dw_w = jax.random.normal(k_dw, (C_in, K, K), dtype=jnp.float32) * 0.1
    # pointwise conv weight: PyTorch shape (C_out, C_in, 1, 1) -> stored here as (C_out, C_in)
    pw_w = jax.random.normal(k_pw, (C_out, C_in), dtype=jnp.float32) * 0.1
    # BatchNorm parameters/buffers (inference-mode BN).
    gamma = 1.0 + 0.1 * jax.random.normal(k_g, (C_in,), dtype=jnp.float32)
    beta = 0.1 * jax.random.normal(k_b, (C_in,), dtype=jnp.float32)
    run_mean = 0.1 * jax.random.normal(k_m, (C_in,), dtype=jnp.float32)
    run_var = jnp.abs(1.0 + 0.1 * jax.random.normal(k_v, (C_in,), dtype=jnp.float32))

    out = separable_conv2d(x, dw_w, gamma, beta, run_mean, run_var, pw_w,
                           kernel_size=K, dilation=DIL)
    out = jax.block_until_ready(out)

    ref = _reference(x, dw_w, gamma, beta, run_mean, run_var, pw_w,
                     kernel_size=K, dilation=DIL)
    assert out.shape == (N, C_out, H, W), out.shape
    assert jnp.allclose(out, ref, atol=1e-4, rtol=1e-4), "mismatch vs reference"

    print("KERNEL_OK")
</pallas_src>

<mosaic_0001>
module attributes {stable_mosaic.version = 11 : i64} {
  func.func @_sepconv_kernel(%arg0: i32, %arg1: memref<1x4x256xf32, #tpu.memory_space<vmem>>, %arg2: memref<9x4x1xf32, #tpu.memory_space<vmem>>, %arg3: memref<3x1x256xf32, #tpu.memory_space<vmem>>, %arg4: memref<8x4xf32, #tpu.memory_space<vmem>>, %arg5: memref<8x1xf32, #tpu.memory_space<vmem>>, %arg6: memref<1x8x256xf32, #tpu.memory_space<vmem>>, %arg7: memref<4x290xf32, #tpu.memory_space<vmem>>) attributes {dimension_semantics = [#tpu.dimension_semantics<parallel>], iteration_bounds = array<i64: 2>, scalar_prefetch = 0 : i64, scratch_operands = 1 : i64, tpu.core_type = #tpu.core_type<tc>, window_params = [{transform_indices = @transform_0, window_bounds = array<i64: 1, 4, 256>}, {pipeline_mode = #tpu.pipeline_mode<synchronous>, transform_indices = @transform_1, window_bounds = array<i64: 9, 4, 1>}, {pipeline_mode = #tpu.pipeline_mode<synchronous>, transform_indices = @transform_2, window_bounds = array<i64: 3, 1, 256>}, {pipeline_mode = #tpu.pipeline_mode<synchronous>, transform_indices = @transform_3, window_bounds = array<i64: 8, 4>}, {pipeline_mode = #tpu.pipeline_mode<synchronous>, transform_indices = @transform_4, window_bounds = array<i64: 8, 1>}, {transform_indices = @transform_5, window_bounds = array<i64: 1, 8, 256>}]} {
    %cst = arith.constant 0.000000e+00 : f32
    %0 = vector.broadcast %cst : f32 to vector<4x290xf32>
    %c0 = arith.constant 0 : index
    %c0_0 = arith.constant 0 : index
    %1 = vector.load %arg7[%c0, %c0_0] : memref<4x290xf32, #tpu.memory_space<vmem>>, vector<4x290xf32>
    tpu.vector_store %arg7[%c0, %c0_0], %0 {strides = array<i32>} : memref<4x290xf32, #tpu.memory_space<vmem>>, vector<4x290xf32>,
    %c0_1 = arith.constant 0 : index
    %c0_2 = arith.constant 0 : index
    %c0_3 = arith.constant 0 : index
    %2 = vector.load %arg1[%c0_1, %c0_2, %c0_3] : memref<1x4x256xf32, #tpu.memory_space<vmem>>, vector<1x4x256xf32>
    %3 = vector.shape_cast %2 : vector<1x4x256xf32> to vector<4x256xf32>
    %c0_4 = arith.constant 0 : index
    %c17 = arith.constant 17 : index
    %4 = vector.load %arg7[%c0_4, %c17] : memref<4x290xf32, #tpu.memory_space<vmem>>, vector<4x256xf32>
    tpu.vector_store %arg7[%c0_4, %c17], %3 {strides = array<i32>} : memref<4x290xf32, #tpu.memory_space<vmem>>, vector<4x256xf32>,
    %cst_5 = arith.constant 0.000000e+00 : f32
    %5 = vector.broadcast %cst_5 : f32 to vector<4x256xf32>
    %c0_6 = arith.constant 0 : index
    %c0_7 = arith.constant 0 : index
    %6 = vector.load %arg7[%c0_6, %c0_7] : memref<4x290xf32, #tpu.memory_space<vmem>>, vector<4x256xf32>
    %c0_8 = arith.constant 0 : index
    %c0_9 = arith.constant 0 : index
    %c0_10 = arith.constant 0 : index
    %7 = vector.load %arg2[%c0_8, %c0_9, %c0_10] : memref<9x4x1xf32, #tpu.memory_space<vmem>>, vector<1x4x1xf32>
    %8 = vector.shape_cast %7 : vector<1x4x1xf32> to vector<4x1xf32>
    %c0_11 = arith.constant 0 : index
    %c0_12 = arith.constant 0 : index
    %c0_13 = arith.constant 0 : index
    %9 = vector.load %arg3[%c0_11, %c0_12, %c0_13] : memref<3x1x256xf32, #tpu.memory_space<vmem>>, vector<1x1x256xf32>
    %10 = vector.shape_cast %9 : vector<1x1x256xf32> to vector<1x256xf32>
    %11 = vector.broadcast %8 : vector<4x1xf32> to vector<4x256xf32>
    %12 = arith.mulf %6, %11 : vector<4x256xf32>
    %13 = vector.broadcast %10 : vector<1x256xf32> to vector<4x256xf32>
    %14 = arith.mulf %12, %13 : vector<4x256xf32>
    %15 = arith.addf %5, %14 : vector<4x256xf32>
    %c0_14 = arith.constant 0 : index
    %c1 = arith.constant 1 : index
    %16 = vector.load %arg7[%c0_14, %c1] : memref<4x290xf32, #tpu.memory_space<vmem>>, vector<4x256xf32>
    %c1_15 = arith.constant 1 : index
    %c0_16 = arith.constant 0 : index
    %c0_17 = arith.constant 0 : index
    %17 = vector.load %arg2[%c1_15, %c0_16, %c0_17] : memref<9x4x1xf32, #tpu.memory_space<vmem>>, vector<1x4x1xf32>
    %18 = vector.shape_cast %17 : vector<1x4x1xf32> to vector<4x1xf32>
    %c1_18 = arith.constant 1 : index
    %c0_19 = arith.constant 0 : index
    %c0_20 = arith.constant 0 : index
    %19 = vector.load %arg3[%c1_18, %c0_19, %c0_20] : memref<3x1x256xf32, #tpu.memory_space<vmem>>, vector<1x1x256xf32>
    %20 = vector.shape_cast %19 : vector<1x1x256xf32> to vector<1x256xf32>
    %21 = vector.broadcast %18 : vector<4x1xf32> to vector<4x256xf32>
    %22 = arith.mulf %16, %21 : vector<4x256xf32>
    %23 = vector.broadcast %20 : vector<1x256xf32> to vector<4x256xf32>
    %24 = arith.mulf %22, %23 : vector<4x256xf32>
    %25 = arith.addf %15, %24 : vector<4x256xf32>
    %c0_21 = arith.constant 0 : index
    %c2 = arith.constant 2 : index
    %26 = vector.load %arg7[%c0_21, %c2] : memref<4x290xf32, #tpu.memory_space<vmem>>, vector<4x256xf32>
    %c2_22 = arith.constant 2 : index
    %c0_23 = arith.constant 0 : index
    %c0_24 = arith.constant 0 : index
    %27 = vector.load %arg2[%c2_22, %c0_23, %c0_24] : memref<9x4x1xf32, #tpu.memory_space<vmem>>, vector<1x4x1xf32>
    %28 = vector.shape_cast %27 : vector<1x4x1xf32> to vector<4x1xf32>
    %c2_25 = arith.constant 2 : index
    %c0_26 = arith.constant 0 : index
    %c0_27 = arith.constant 0 : index
    %29 = vector.load %arg3[%c2_25, %c0_26, %c0_27] : memref<3x1x256xf32, #tpu.memory_space<vmem>>, vector<1x1x256xf32>
    %30 = vector.shape_cast %29 : vector<1x1x256xf32> to vector<1x256xf32>
    %31 = vector.broadcast %28 : vector<4x1xf32> to vector<4x256xf32>
    %32 = arith.mulf %26, %31 : vector<4x256xf32>
    %33 = vector.broadcast %30 : vector<1x256xf32> to vector<4x256xf32>
    %34 = arith.mulf %32, %33 : vector<4x256xf32>
    %35 = arith.addf %25, %34 : vector<4x256xf32>
    %c0_28 = arith.constant 0 : index
    %c16 = arith.constant 16 : index
    %36 = vector.load %arg7[%c0_28, %c16] : memref<4x290xf32, #tpu.memory_space<vmem>>, vector<4x256xf32>
    %c3 = arith.constant 3 : index
    %c0_29 = arith.constant 0 : index
    %c0_30 = arith.constant 0 : index
    %37 = vector.load %arg2[%c3, %c0_29, %c0_30] : memref<9x4x1xf32, #tpu.memory_space<vmem>>, vector<1x4x1xf32>
    %38 = vector.shape_cast %37 : vector<1x4x1xf32> to vector<4x1xf32>
    %c0_31 = arith.constant 0 : index
    %c0_32 = arith.constant 0 : index
    %c0_33 = arith.constant 0 : index
    %39 = vector.load %arg3[%c0_31, %c0_32, %c0_33] : memref<3x1x256xf32, #tpu.memory_space<vmem>>, vector<1x1x256xf32>
    %40 = vector.shape_cast %39 : vector<1x1x256xf32> to vector<1x256xf32>
    %41 = vector.broadcast %38 : vector<4x1xf32> to vector<4x256xf32>
    %42 = arith.mulf %36, %41 : vector<4x256xf32>
    %43 = vector.broadcast %40 : vector<1x256xf32> to vector<4x256xf32>
    %44 = arith.mulf %42, %43 : vector<4x256xf32>
    %45 = arith.addf %35, %44 : vector<4x256xf32>
    %c0_34 = arith.constant 0 : index
    %c17_35 = arith.constant 17 : index
    %46 = vector.load %arg7[%c0_34, %c17_35] : memref<4x290xf32, #tpu.memory_space<vmem>>, vector<4x256xf32>
    %c4 = arith.constant 4 : index
    %c0_36 = arith.constant 0 : index
    %c0_37 = arith.constant 0 : index
    %47 = vector.load %arg2[%c4, %c0_36, %c0_37] : memref<9x4x1xf32, #tpu.memory_space<vmem>>, vector<1x4x1xf32>
    %48 = vector.shape_cast %47 : vector<1x4x1xf32> to vector<4x1xf32>
    %c1_38 = arith.constant 1 : index
    %c0_39 = arith.constant 0 : index
    %c0_40 = arith.constant 0 : index
    %49 = vector.load %arg3[%c1_38, %c0_39, %c0_40] : memref<3x1x256xf32, #tpu.memory_space<vmem>>, vector<1x1x256xf32>
    %50 = vector.shape_cast %49 : vector<1x1x256xf32> to vector<1x256xf32>
    %51 = vector.broadcast %48 : vector<4x1xf32> to vector<4x256xf32>
    %52 = arith.mulf %46, %51 : vector<4x256xf32>
    %53 = vector.broadcast %50 : vector<1x256xf32> to vector<4x256xf32>
    %54 = arith.mulf %52, %53 : vector<4x256xf32>
    %55 = arith.addf %45, %54 : vector<4x256xf32>
    %c0_41 = arith.constant 0 : index
    %c18 = arith.constant 18 : index
    %56 = vector.load %arg7[%c0_41, %c18] : memref<4x290xf32, #tpu.memory_space<vmem>>, vector<4x256xf32>
    %c5 = arith.constant 5 : index
    %c0_42 = arith.constant 0 : index
    %c0_43 = arith.constant 0 : index
    %57 = vector.load %arg2[%c5, %c0_42, %c0_43] : memref<9x4x1xf32, #tpu.memory_space<vmem>>, vector<1x4x1xf32>
    %58 = vector.shape_cast %57 : vector<1x4x1xf32> to vector<4x1xf32>
    %c2_44 = arith.constant 2 : index
    %c0_45 = arith.constant 0 : index
    %c0_46 = arith.constant 0 : index
    %59 = vector.load %arg3[%c2_44, %c0_45, %c0_46] : memref<3x1x256xf32, #tpu.memory_space<vmem>>, vector<1x1x256xf32>
    %60 = vector.shape_cast %59 : vector<1x1x256xf32> to vector<1x256xf32>
    %61 = vector.broadcast %58 : vector<4x1xf32> to vector<4x256xf32>
    %62 = arith.mulf %56, %61 : vector<4x256xf32>
    %63 = vector.broadcast %60 : vector<1x256xf32> to vector<4x256xf32>
    %64 = arith.mulf %62, %63 : vector<4x256xf32>
    %65 = arith.addf %55, %64 : vector<4x256xf32>
    %c0_47 = arith.constant 0 : index
    %c32 = arith.constant 32 : index
    %66 = vector.load %arg7[%c0_47, %c32] : memref<4x290xf32, #tpu.memory_space<vmem>>, vector<4x256xf32>
    %c6 = arith.constant 6 : index
    %c0_48 = arith.constant 0 : index
    %c0_49 = arith.constant 0 : index
    %67 = vector.load %arg2[%c6, %c0_48, %c0_49] : memref<9x4x1xf32, #tpu.memory_space<vmem>>, vector<1x4x1xf32>
    %68 = vector.shape_cast %67 : vector<1x4x1xf32> to vector<4x1xf32>
    %c0_50 = arith.constant 0 : index
    %c0_51 = arith.constant 0 : index
    %c0_52 = arith.constant 0 : index
    %69 = vector.load %arg3[%c0_50, %c0_51, %c0_52] : memref<3x1x256xf32, #tpu.memory_space<vmem>>, vector<1x1x256xf32>
    %70 = vector.shape_cast %69 : vector<1x1x256xf32> to vector<1x256xf32>
    %71 = vector.broadcast %68 : vector<4x1xf32> to vector<4x256xf32>
    %72 = arith.mulf %66, %71 : vector<4x256xf32>
    %73 = vector.broadcast %70 : vector<1x256xf32> to vector<4x256xf32>
    %74 = arith.mulf %72, %73 : vector<4x256xf32>
    %75 = arith.addf %65, %74 : vector<4x256xf32>
    %c0_53 = arith.constant 0 : index
    %c33 = arith.constant 33 : index
    %76 = vector.load %arg7[%c0_53, %c33] : memref<4x290xf32, #tpu.memory_space<vmem>>, vector<4x256xf32>
    %c7 = arith.constant 7 : index
    %c0_54 = arith.constant 0 : index
    %c0_55 = arith.constant 0 : index
    %77 = vector.load %arg2[%c7, %c0_54, %c0_55] : memref<9x4x1xf32, #tpu.memory_space<vmem>>, vector<1x4x1xf32>
    %78 = vector.shape_cast %77 : vector<1x4x1xf32> to vector<4x1xf32>
    %c1_56 = arith.constant 1 : index
    %c0_57 = arith.constant 0 : index
    %c0_58 = arith.constant 0 : index
    %79 = vector.load %arg3[%c1_56, %c0_57, %c0_58] : memref<3x1x256xf32, #tpu.memory_space<vmem>>, vector<1x1x256xf32>
    %80 = vector.shape_cast %79 : vector<1x1x256xf32> to vector<1x256xf32>
    %81 = vector.broadcast %78 : vector<4x1xf32> to vector<4x256xf32>
    %82 = arith.mulf %76, %81 : vector<4x256xf32>
    %83 = vector.broadcast %80 : vector<1x256xf32> to vector<4x256xf32>
    %84 = arith.mulf %82, %83 : vector<4x256xf32>
    %85 = arith.addf %75, %84 : vector<4x256xf32>
    %c0_59 = arith.constant 0 : index
    %c34 = arith.constant 34 : index
    %86 = vector.load %arg7[%c0_59, %c34] : memref<4x290xf32, #tpu.memory_space<vmem>>, vector<4x256xf32>
    %c8 = arith.constant 8 : index
    %c0_60 = arith.constant 0 : index
    %c0_61 = arith.constant 0 : index
    %87 = vector.load %arg2[%c8, %c0_60, %c0_61] : memref<9x4x1xf32, #tpu.memory_space<vmem>>, vector<1x4x1xf32>
    %88 = vector.shape_cast %87 : vector<1x4x1xf32> to vector<4x1xf32>
    %c2_62 = arith.constant 2 : index
    %c0_63 = arith.constant 0 : index
    %c0_64 = arith.constant 0 : index
    %89 = vector.load %arg3[%c2_62, %c0_63, %c0_64] : memref<3x1x256xf32, #tpu.memory_space<vmem>>, vector<1x1x256xf32>
    %90 = vector.shape_cast %89 : vector<1x1x256xf32> to vector<1x256xf32>
    %91 = vector.broadcast %88 : vector<4x1xf32> to vector<4x256xf32>
    %92 = arith.mulf %86, %91 : vector<4x256xf32>
    %93 = vector.broadcast %90 : vector<1x256xf32> to vector<4x256xf32>
    %94 = arith.mulf %92, %93 : vector<4x256xf32>
    %95 = arith.addf %85, %94 : vector<4x256xf32>
    %cst_65 = arith.constant 0.000000e+00 : f32
    %96 = vector.broadcast %cst_65 : f32 to vector<8x256xf32>
    %c0_66 = arith.constant 0 : index
    %c0_67 = arith.constant 0 : index
    %97 = vector.load %arg4[%c0_66, %c0_67] : memref<8x4xf32, #tpu.memory_space<vmem>>, vector<8x1xf32>
    %98 = vector.extract_strided_slice %95 {offsets = [0, 0], sizes = [1, 256], strides = [1, 1]} : vector<4x256xf32> to vector<1x256xf32>
    %99 = vector.broadcast %97 : vector<8x1xf32> to vector<8x256xf32>
    %100 = vector.broadcast %98 : vector<1x256xf32> to vector<8x256xf32>
    %101 = arith.mulf %99, %100 : vector<8x256xf32>
    %102 = arith.addf %96, %101 : vector<8x256xf32>
    %c0_68 = arith.constant 0 : index
    %c1_69 = arith.constant 1 : index
    %103 = vector.load %arg4[%c0_68, %c1_69] : memref<8x4xf32, #tpu.memory_space<vmem>>, vector<8x1xf32>
    %104 = vector.extract_strided_slice %95 {offsets = [1, 0], sizes = [1, 256], strides = [1, 1]} : vector<4x256xf32> to vector<1x256xf32>
    %105 = vector.broadcast %103 : vector<8x1xf32> to vector<8x256xf32>
    %106 = vector.broadcast %104 : vector<1x256xf32> to vector<8x256xf32>
    %107 = arith.mulf %105, %106 : vector<8x256xf32>
    %108 = arith.addf %102, %107 : vector<8x256xf32>
    %c0_70 = arith.constant 0 : index
    %c2_71 = arith.constant 2 : index
    %109 = vector.load %arg4[%c0_70, %c2_71] : memref<8x4xf32, #tpu.memory_space<vmem>>, vector<8x1xf32>
    %110 = vector.extract_strided_slice %95 {offsets = [2, 0], sizes = [1, 256], strides = [1, 1]} : vector<4x256xf32> to vector<1x256xf32>
    %111 = vector.broadcast %109 : vector<8x1xf32> to vector<8x256xf32>
    %112 = vector.broadcast %110 : vector<1x256xf32> to vector<8x256xf32>
    %113 = arith.mulf %111, %112 : vector<8x256xf32>
    %114 = arith.addf %108, %113 : vector<8x256xf32>
    %c0_72 = arith.constant 0 : index
    %c3_73 = arith.constant 3 : index
    %115 = vector.load %arg4[%c0_72, %c3_73] : memref<8x4xf32, #tpu.memory_space<vmem>>, vector<8x1xf32>
    %116 = vector.extract_strided_slice %95 {offsets = [3, 0], sizes = [1, 256], strides = [1, 1]} : vector<4x256xf32> to vector<1x256xf32>
    %117 = vector.broadcast %115 : vector<8x1xf32> to vector<8x256xf32>
    %118 = vector.broadcast %116 : vector<1x256xf32> to vector<8x256xf32>
    %119 = arith.mulf %117, %118 : vector<8x256xf32>
    %120 = arith.addf %114, %119 : vector<8x256xf32>
    %c0_74 = arith.constant 0 : index
    %c0_75 = arith.constant 0 : index
    %121 = vector.load %arg5[%c0_74, %c0_75] : memref<8x1xf32, #tpu.memory_space<vmem>>, vector<8x1xf32>
    %122 = vector.broadcast %121 : vector<8x1xf32> to vector<8x256xf32>
    %123 = arith.addf %120, %122 : vector<8x256xf32>
    %c0_76 = arith.constant 0 : index
    %c0_77 = arith.constant 0 : index
    %c0_78 = arith.constant 0 : index
    %124 = vector.load %arg6[%c0_76, %c0_77, %c0_78] : memref<1x8x256xf32, #tpu.memory_space<vmem>>, vector<1x8x256xf32>
    %125 = vector.shape_cast %124 : vector<1x8x256xf32> to vector<8x256xf32>
    %126 = vector.shape_cast %123 : vector<8x256xf32> to vector<1x8x256xf32>
    tpu.vector_store %arg6[%c0_76, %c0_77, %c0_78], %126 {strides = array<i32>} : memref<1x8x256xf32, #tpu.memory_space<vmem>>, vector<1x8x256xf32>,
    return
  }
  func.func @transform_0(%arg0: i32) -> (i32, i32, i32) {
    %c0_i32 = arith.constant 0 : i32
    %c0_i32_0 = arith.constant 0 : i32
    %c0_i32_1 = arith.constant 0 : i32
    return %arg0, %c0_i32, %c0_i32_0 : i32, i32, i32
  }
  func.func @transform_1(%arg0: i32) -> (i32, i32, i32) {
    %c0_i32 = arith.constant 0 : i32
    %c0_i32_0 = arith.constant 0 : i32
    %c0_i32_1 = arith.constant 0 : i32
    %c0_i32_2 = arith.constant 0 : i32
    return %c0_i32, %c0_i32_0, %c0_i32_1 : i32, i32, i32
  }
  func.func @transform_2(%arg0: i32) -> (i32, i32, i32) {
    %c0_i32 = arith.constant 0 : i32
    %c0_i32_0 = arith.constant 0 : i32
    %c0_i32_1 = arith.constant 0 : i32
    %c0_i32_2 = arith.constant 0 : i32
    return %c0_i32, %c0_i32_0, %c0_i32_1 : i32, i32, i32
  }
  func.func @transform_3(%arg0: i32) -> (i32, i32) {
    %c0_i32 = arith.constant 0 : i32
    %c0_i32_0 = arith.constant 0 : i32
    %c0_i32_1 = arith.constant 0 : i32
    return %c0_i32, %c0_i32_0 : i32, i32
  }
  func.func @transform_4(%arg0: i32) -> (i32, i32) {
    %c0_i32 = arith.constant 0 : i32
    %c0_i32_0 = arith.constant 0 : i32
    %c0_i32_1 = arith.constant 0 : i32
    return %c0_i32, %c0_i32_0 : i32, i32
  }
  func.func @transform_5(%arg0: i32) -> (i32, i32, i32) {
    %c0_i32 = arith.constant 0 : i32
    %c0_i32_0 = arith.constant 0 : i32
    %c0_i32_1 = arith.constant 0 : i32
    return %arg0, %c0_i32, %c0_i32_0 : i32, i32, i32
  }
}

</mosaic_0001>

<bundles_post_ra>
// kernel: tpu_custom_call.1
= control target key start
LH: loop header
LB: loop body
LE: loop exit
PB: predicated region body
PF: predicated region fallthrough
CT: control target
= control target key end

     0   :  { %10 = vsyncpa [#allocation4], 0  ;;  %s1117_s0 = inlined_call_operand.vmem [shape: f32[2,4,256], index: 0, kind: input, shape index: {}]   ;;  %s1118_s1 = inlined_call_operand.vmem [shape: f32[9,4,1], index: 1, kind: input, shape index: {}]   ;;  %s1119_s2 = inlined_call_operand.vmem [shape: f32[3,1,256], index: 2, kind: input, shape index: {}]   ;;  %s1120_s3 = inlined_call_operand.vmem [shape: f32[8,4], index: 3, kind: input, shape index: {}]   ;;  %s1121_s4 = inlined_call_operand.vmem [shape: f32[8,1], index: 4, kind: input, shape index: {}]   ;;  %s1122_s5 = inlined_call_operand.hbm [shape: f32[2,8,256], index: 5, kind: output, shape index: {}]  }
   0x1   :  { %12 = vsyncpa [#allocation4 + $0x1], 0  ;;  %s912_s18 = smov 0   ;;  %s914_s19 = smov 0  }
   0x2   :  { %s916_s20 = smov 0   ;;  %s918_s21 = smov 0  }
   0x3 LB: > { %s933_s22 = sadd.s32 4294967295, %s858_s21   ;;  %s703_s23 = sadd.s32 4294967294, %s858_s21   ;;  %s858_s21 = sphi %s918_s21, %s1128_s21   ;;  %s854_s20 = sphi %s916_s20, %s1127_s20   ;;  %s850_s19 = sphi %s914_s19, %s1126_s19   ;;  %s846_s18 = sphi %s912_s18, %s1125_s18  }
   0x4   : > { %s937_s24 = sadd.s32 1, %s858_s21   ;;  %s135_s25 = sadd.s32 1, %s854_s20 }
   0x5   : > { %s132_s26 = ssub.s32 %s858_s21, %s937_s24  ;;  %p145_p0 = scmp.ne.s32.totalorder %s854_s20, %s850_s19 }
   0x6   : > { %p133_p1 = scmp.eq.s32.totalorder %s132_s26, 0  ;;  %p146_p2 = scmp.eq.s32.totalorder %s933_s22, 1 }
   0x7   : > { %p151_p3 = scmp.ne.s32.totalorder %s850_s19, %s846_s18  ;;  %p152_p4 = scmp.eq.s32.totalorder %s703_s23, 1 }
   0x8   : > { %s948_s27 = scalar_select %p133_p1, %s854_s20, %s135_s25  }
   0x9   : > { %p950_p5 = por %p146_p2, %p145_p0  ;;  %p954_p6 = por %p152_p4, %p151_p3 }
   0xa   : > { %p706_p7 = scmp.ge.s32.totalorder %s858_s21, 1  ;;  %p190_p8 = scmp.lt.s32.totalorder %s858_s21, 3 }
   0xc   : > { %p191_p9 = pnand %p706_p7, %p190_p8 }
   0xd   : > { %p218_p10 = scmp.lt.s32.totalorder (!%p191_p9), %s933_s22, 1  ;;  %s861_s16 = smov (!%p191_p9), 17  }
   0xe   : > { %194 = sbr.rel (%p191_p9) target bundleno = 339 (0x153), region = 40  ;;  %s862_s17 = smov (!%p191_p9), 2  }
   0xf   : > { %s863_s26 = smov (!%p191_p9), 1   ;;  %s865_s25 = smov (!%p191_p9), 18  }
  0x10   : > { %s868_s9 = smov (!%p191_p9), 34   ;;  %s871_s10 = smov (!%p191_p9), 127  }
  0x11   : > { %s874_s13 = smov (!%p191_p9), 111   ;;  %s875_s14 = smov (!%p191_p9), 110  }
  0x12   : > { %s880_s23 = smov (!%p191_p9), 94   ;;  %s726_s8 = sshll.u32 (!%p191_p9), %s933_s22, 4 }
  0x13   : > { %v710_v0 = vld [vmem:[%s1118_s1 + $0x4] sm:$0xf]  ;;  %v860_v1 = vmov 0   ;;  %v711_v2 = vld [vmem:[%s1119_s2 + $0x2] sm:$0x3]  ;;  %s219_s11 = scalar_select %p218_p10, %s933_s22, 1 }
  0x14   : > { %789 = vset.pattern.permute.xlu1 %v860_v1  ;;  %788 = vset.pattern.permute.xlu0 %v860_v1  ;;  %v713_v3 = vld [vmem:[%s1119_s2 + $0x4] sm:$0x3]  ;;  %v282_v4 = vperm.slane %v711_v2, 1  ;;  %v281_v7 = vperm.slane %v711_v2, 0  ;;  %vm258_vm0 = vcmask 1043456   ;;  %vm224_vm1 = vcmask 273408  }
  0x15   : > { %271 = vperm.xlu1 %789, %v710_v0   ;;  %v323_v5 = vperm.slane %v713_v3, 0  ;;  %v324_v6 = vperm.slane %v713_v3, 1  ;;  %790 = vset.pattern.permute.xlu2 %v860_v1  ;;  %s725_s12 = sshll.u32 %s219_s11, 3  ;;  %v243_v13 = vld [vmem:[%s1119_s2] sm:$0x3]  ;;  %s864_s11 = smov 16  }
  0x16   : > { %v283_v8 = vrot.slane %v282_v4, 4  ;;  %s222_s15 = scalar_lea.vmem %s1117_s0, %s725_s12  ;;  %v242_v14 = vld [vmem:[%s1118_s1] sm:$0xf]  ;;  %v714_v15 = vld [vmem:[%s1118_s1 + $0xc] sm:$0xf]  ;;  %v256_v16 = vperm.slane %v243_v13, 1 }
  0x17   : > { %v325_v9 = vrot.slane %v324_v6, 4  ;;  %v226_v10 = vld [vmem:[%s222_s15] sm:$0xff]  ;;  %v712_v17 = vld [vmem:[%s1118_s1 + $0x8] sm:$0xf]  ;;  %v255_v18 = vperm.slane %v243_v13, 0  ;;  %v869_v26 = vmov 0.0  }
  0x18   : > { %228 = vrot.lane.b32.xlu0 %v226_v10, %s861_s16  ;;  %v284_v12 = vsel %vm258_vm0, %v281_v7, %v283_v8  ;;  %v257_v19 = vrot.slane %v256_v16, 4  ;;  %v715_v21 = vld [vmem:[%s1118_s1 + $0x10] sm:$0xf]  ;;  %v716_v22 = vld [vmem:[%s1118_s1 + $0x14] sm:$0xf]  ;;  %223 = vst [vmem:[#allocation2] sm:$0xff] %v869_v26 }
  0x19   : > { %v326_v11 = vsel %vm258_vm0, %v323_v5, %v325_v9  ;;  %v717_v23 = vld [vmem:[%s1118_s1 + $0x18] sm:$0xf]  ;;  %v718_v24 = vld [vmem:[%s1118_s1 + $0x1c] sm:$0xf]  ;;  %v719_v25 = vld [vmem:[%s1118_s1 + $0x20] sm:$0xf] }
  0x1a   : > { %327 = vrot.lane.b32.xlu2 %v326_v11, %s862_s17  ;;  %v992_v20 = vsel %vm258_vm0, %v255_v18, %v257_v19  ;;  %225 = vst.msk [vmem:[#allocation2 + $0x8] sm:$0xf] %vm224_vm1, %v869_v26  ;;  %vm235_vm2 = vcmask 1043592   ;;  %vm236_vm3 = vcmask 1047556   ;;  %vm231_vm4 = vcmask 138240   ;;  %s873_s12 = smov 112  }
  0x1b   : > { %vm239_vm5 = vcmask 134144   ;;  %v870_v30 = vmov 839922192   ;;  %vm237_vm6 = vmor %vm236_vm3, %vm235_vm2  ;;  %vm288_vm7 = vcmask 7168   ;;  %vm365_vm8 = vcmask 130048   ;;  %s878_s15 = smov 96  }
  0x1c   : > { %v249_v31 = vunpack.c.l.s4 %v870_v30  ;;  %v877_v18 = vmov 1   ;;  %vm330_vm9 = vcmask 15360   ;;  %vm504_vm10 = vcmask 269312   ;;  %s879_s17 = smov 95  }
  0x1d   : > { %285 = vrot.lane.b32.xlu1 %v284_v12, %s863_s26  ;;  %s866_s26 = smov 32   ;;  %vm469_vm11 = vcmask 261120   ;;  %vm434_vm12 = vcmask 146432   ;;  %vm539_vm13 = vcmask 277504   ;;  %vm303_vm14 = vcmask 1039360  }
  0x1e   : > { %v1014_v35 = vunpack.c.0.s8 %v249_v31  ;;  %vm345_vm15 = vcmask 1031168   ;;  %vm380_vm1 = vcmask 916480   ;;  %vm414_vm2 = vcmask 908288  }
  0x1f   : > { %vm449_vm3 = vcmask 900096  }
  0x20   : > { %246 = vperm.xlu0 %788, %v242_v14  }
  0x22   : > { %353 = vperm.xlu2 %790, %v714_v15  }
  0x25   : > { %313 = vperm.xlu1 %789, %v712_v17   ;;  %v876_v17 = vmov 2  }
  0x28   : > { %362 = vrot.lane.b32.xlu0 %v992_v20, %s864_s11  ;;  %s872_s11 = smov 126  }
  0x2a   : > { %397 = vrot.lane.b32.xlu2 %v284_v12, %s861_s16  ;;  %s867_s16 = smov 33  }
  0x2d   : > { %388 = vperm.xlu1 %789, %v715_v21  }
  0x30   : > { %422 = vperm.xlu0 %788, %v716_v22  }
  0x32   : > { %457 = vperm.xlu2 %790, %v717_v23  }
  0x35   : > { %431 = vrot.lane.b32.xlu1 %v326_v11, %s865_s25 }
  0x38   : > { %466 = vrot.lane.b32.xlu0 %v992_v20, %s866_s26  ;;  %s816_s26 = scalar_lea.hbm %s1122_s5, 32 }
  0x3a   : > { %501 = vrot.lane.b32.xlu2 %v284_v12, %s867_s16  ;;  %s215_s16 = sand.u32 1, %s850_s19  }
  0x3b   : > { %s707_s7 = sshll.u32 %s215_s16, 4 }
  0x3d   : > { %492 = vperm.xlu1 %789, %v718_v24  }
  0x40   : > { %527 = vperm.xlu0 %788, %v719_v25  }
  0x45   : > { %536 = vrot.lane.b32.xlu1 %v326_v11, %s868_s9 }
  0x46   : > { %792 = vset.pattern.permute.xlu1 %v876_v17 }
  0x48   : > { %791 = vset.pattern.permute.xlu0 %v877_v18 }
  0x74   : > { %v1011_v28 = vpop.permute.xlu2 %327 }
  0x75   : > { %v329_v49 = vrot.slane %v1011_v28, 4 }
  0x7c   : > { %v354_v36 = vpop.permute.xlu2 %353 }
  0x7d   : > { %v358_v47 = vperm.slane %v354_v36, %v1014_v35 }
  0x84   : > { %v398_v51 = vpop.permute.xlu2 %397 }
  0x85   : > { %v399_v58 = vrot.slane %v398_v51, 4 }
  0x87   : > { %v272_v27 = vpop.permute.xlu1 %271  ;;  %v400_v14 = vsel %vm231_vm4, %v399_v58, %v398_v51 }
  0x88   : > { %v276_v38 = vperm.slane %v272_v27, %v1014_v35 }
  0x8a   : > { %v229_v29 = vpop.permute.xlu0 %228 }
  0x8b   : > { %v230_v32 = vrot.slane %v229_v29, 4 }
  0x8c   : > { %v458_v0 = vpop.permute.xlu2 %457 }
  0x8d   : > { %v232_v33 = vsel %vm231_vm4, %v230_v32, %v229_v29  ;;  %240 = vst.msk [vmem:[#allocation2 + $0x8] sm:$0xf] %vm239_vm5, %v230_v32  ;;  %v462_v6 = vperm.slane %v458_v0, %v1014_v35  ;;  %v331_v29 = vsel %vm330_vm9, %v329_v49, %v1011_v28  ;;  %vm484_vm4 = vcmask 785408  }
  0x8e   : > { %238 = vst.msk [vmem:[#allocation2] sm:$0xff] %vm237_vm6, %v232_v33  ;;  %vm519_vm5 = vcmask 777216   ;;  %vm554_vm6 = vcmask 769024  }
  0x8f   : > { %v286_v34 = vpop.permute.xlu1 %285 }
  0x90   : > { %v287_v43 = vrot.slane %v286_v34, 4 }
  0x92   : > { %v247_v37 = vpop.permute.xlu0 %246  ;;  %v289_v8 = vsel %vm288_vm7, %v287_v43, %v286_v34 }
  0x93   : > { %v251_v39 = vperm.slane %v247_v37, %v1014_v35 }
  0x94   : > { %v1018_v40 = vld [vmem:[#allocation2 + $0x8] sm:$0xf]  ;;  %v502_v19 = vpop.permute.xlu2 %501 }
  0x95   : > { %v1020_v41 = vld [vmem:[#allocation2] sm:$0xff]  ;;  %v279_v42 = vmul.f32 %v276_v38, %v1018_v40  ;;  %v361_v54 = vmul.f32 %v358_v47, %v1018_v40  ;;  %v465_v11 = vmul.f32 %v462_v6, %v1018_v40  ;;  %v503_v26 = vrot.slane %v502_v19, 4 }
  0x96   : > { %v1024_v45 = vmul.f32 %v1020_v41, %v251_v39  ;;  %v278_v4 = vmul.f32 %v276_v38, %v1020_v41  ;;  %v360_v22 = vmul.f32 %v358_v47, %v1020_v41  ;;  %v464_v36 = vmul.f32 %v462_v6, %v1020_v41 }
  0x97   : > { %v314_v44 = vpop.permute.xlu1 %313  ;;  %v293_v48 = vmul.f32 %v287_v43, %v279_v42  ;;  %v505_v31 = vsel %vm504_vm10, %v503_v26, %v502_v19 }
  0x98   : > { %v318_v46 = vperm.slane %v314_v44, %v1014_v35  ;;  %v292_v9 = vmul.f32 %v289_v8, %v278_v4  ;;  %v261_v4 = vmul.f32 %v992_v20, %v1024_v45 }
  0x99   : > { %298 = vrot.lane.b32.xlu2 %v293_v48, %s871_s10 }
  0x9a   : > { %v321_v50 = vmul.f32 %v318_v46, %v1018_v40  ;;  %v363_v52 = vpop.permute.xlu0 %362  ;;  %v320_v25 = vmul.f32 %v318_v46, %v1020_v41 }
  0x9b   : > { %v364_v55 = vrot.slane %v363_v52, 4 }
  0x9c   : > { %v335_v53 = vmul.f32 %v329_v49, %v321_v50  ;;  %v334_v33 = vmul.f32 %v331_v29, %v320_v25 }
  0x9d   : > { %v370_v56 = vmul.f32 %v364_v55, %v361_v54  ;;  %v366_v21 = vsel %vm365_vm8, %v364_v55, %v363_v52  ;;  %v881_v54 = vmov 3  }
  0x9e   : > { %340 = vrot.lane.b32.xlu1 %v335_v53, %s872_s11  ;;  %v369_v27 = vmul.f32 %v366_v21, %v360_v22  ;;  %v558_v53 = vld [vmem:[%s1120_s3] sm:$0xff] }
  0x9f   : > { %v389_v57 = vpop.permute.xlu1 %388  ;;  %375 = vrot.lane.b32.xlu0 %v370_v56, %s873_s12 }
  0xa0   : > { %v393_v59 = vperm.slane %v389_v57, %v1014_v35 }
  0xa2   : > { %v396_v60 = vmul.f32 %v393_v59, %v1018_v40  ;;  %v423_v61 = vpop.permute.xlu0 %422  ;;  %v395_v13 = vmul.f32 %v393_v59, %v1020_v41 }
  0xa3   : > { %v427_v63 = vperm.slane %v423_v61, %v1014_v35 }
  0xa4   : > { %v404_v62 = vmul.f32 %v399_v58, %v396_v60  ;;  %v403_v24 = vmul.f32 %v400_v14, %v395_v13 }
  0xa5   : > { %v430_v2 = vmul.f32 %v427_v63, %v1018_v40  ;;  %v429_v43 = vmul.f32 %v427_v63, %v1020_v41 }
  0xa6   : > { %409 = vrot.lane.b32.xlu2 %v404_v62, %s874_s13 }
  0xa7   : > { %v432_v3 = vpop.permute.xlu1 %431 }
  0xa8   : > { %v433_v5 = vrot.slane %v432_v3, 4 }
  0xaa   : > { %v439_v7 = vmul.f32 %v433_v5, %v430_v2  ;;  %v467_v10 = vpop.permute.xlu0 %466  ;;  %v435_v42 = vsel %vm434_vm12, %v433_v5, %v432_v3 }
  0xab   : > { %v468_v12 = vrot.slane %v467_v10, 4  ;;  %v438_v47 = vmul.f32 %v435_v42, %v429_v43 }
  0xac   : > { %444 = vrot.lane.b32.xlu1 %v439_v7, %s875_s14 }
  0xad   : > { %v474_v15 = vmul.f32 %v468_v12, %v465_v11  ;;  %v470_v34 = vsel %vm469_vm11, %v468_v12, %v467_v10 }
  0xae   : > { %296 = vrot.lane.b32.xlu2 %v292_v9, %s871_s10  ;;  %v473_v28 = vmul.f32 %v470_v34, %v464_v36 }
  0xaf   : > { %v493_v16 = vpop.permute.xlu1 %492  ;;  %479 = vrot.lane.b32.xlu0 %v474_v15, %s878_s15 }
  0xb0   : > { %v497_v23 = vperm.slane %v493_v16, %v1014_v35 }
  0xb2   : > { %v499_v30 = vmul.f32 %v497_v23, %v1020_v41  ;;  %v528_v32 = vpop.permute.xlu0 %527  ;;  %v500_v48 = vmul.f32 %v497_v23, %v1018_v40 }
  0xb3   : > { %v532_v38 = vperm.slane %v528_v32, %v1014_v35 }
  0xb4   : > { %407 = vrot.lane.b32.xlu1 %v403_v24, %s874_s13  ;;  %v508_v37 = vmul.f32 %v505_v31, %v499_v30  ;;  %v509_v35 = vmul.f32 %v503_v26, %v500_v48 }
  0xb5   : > { %v535_v44 = vmul.f32 %v532_v38, %v1018_v40  ;;  %v534_v51 = vmul.f32 %v532_v38, %v1020_v41  ;;  %v617_v40 = vld [vmem:[%s1121_s4] sm:$0xff] }
  0xb6   : > { %373 = vrot.lane.b32.xlu2 %v369_v27, %s873_s12  ;;  %s217_s12 = scalar_lea.vmem [#allocation3], %s707_s7 }
  0xb7   : > { %338 = vrot.lane.b32.xlu0 %v334_v33, %s872_s11  ;;  %v537_v39 = vpop.permute.xlu1 %536  ;;  %s639_s11 = scalar_lea.hbm %s1122_s5, %s726_s8  ;;  %s641_s22 = sshll.u32 %s217_s12, 4  ;;  %s642_s22 = int_to_ptr.vmem [resolvable:$true] %s641_s22 }
  0xb8   : > { %v538_v46 = vrot.slane %v537_v39, 4  ;;  %s643_s13 = sshll.u32 %s639_s11, 4  ;;  %s644_s13 = int_to_ptr.hbm [resolvable:$true] %s643_s13 }
  0xba   : > { %v544_v49 = vmul.f32 %v538_v46, %v535_v44  ;;  %v540_v50 = vsel %vm539_vm13, %v538_v46, %v537_v39 }
  0xbb   : > { %v543_v52 = vmul.f32 %v540_v50, %v534_v51 }
  0xbc   : > { %512 = vrot.lane.b32.xlu1 %v508_v37, %s879_s17 }
  0xbe   : > { %477 = vrot.lane.b32.xlu2 %v473_v28, %s878_s15  ;;  %s810_s15 = sshra.s32 %s644_s13, 4  ;;  %s811_s15 = int_to_ptr.hbm [resolvable:$true] %s810_s15 }
  0xbf   : > { %442 = vrot.lane.b32.xlu0 %v438_v47, %s875_s14  ;;  %s628_s14 = scalar_lea.sflag [#allocation4], %s215_s16  ;;  %p817_p0 = scmp.lt.s32.totalorder %s811_s15, %s1122_s5 }
  0xc4   : > { %549 = vrot.lane.b32.xlu1 %v544_v49, %s880_s23 }
  0xc6   : > { %514 = vrot.lane.b32.xlu2 %v509_v35, %s879_s17  ;;  %s812_s17 = scalar_lea.hbm %s811_s15, 16 }
  0xc7   : > { %547 = vrot.lane.b32.xlu0 %v543_v52, %s880_s23  ;;  %p813_p11 = scmp.ne.s32.totalorder %s811_s15, %s812_s17  ;;  %p818_p1 = scmp.lt.s32.totalorder %s816_s26, %s812_s17 }
  0xc9   : > { %p814_p12 = pnand %p813_p11, %p950_p5  ;;  %p819_p2 = por %p818_p1, %p817_p0 }
  0xcb   : > { %p815_p13 = pneg %p814_p12 }
  0xcc   : > { %590 = vperm.xlu1 %792, %v558_v53  }
  0xcd   : > { %p820_p3 = pnand %p819_p2, %p815_p13 }
  0xce   : > { %561 = vperm.xlu2 %790, %v558_v53  }
  0xcf   : > { %576 = vperm.xlu0 %791, %v558_v53  }
  0xd4   : > { %794 = vset.pattern.permute.xlu1 %v860_v1 }
  0xd5   : > { %620 = vperm.xlu1 %794, %v617_v40  }
  0xd6   : > { %793 = vset.pattern.permute.xlu2 %v881_v54 }
  0xd7   : > { %604 = vperm.xlu2 %793, %v558_v53   ;;  %795 = vset.pattern.permute.xlu0 %v860_v1 }
  0xf3   : > { %v299_v41 = vpop.permute.xlu2 %298 }
  0xf4   : > { %v301_v63 = vrot.slane %v299_v41, 4 }
 0x100   : > { %v410_v55 = vpop.permute.xlu2 %409 }
 0x101   : > { %v412_v16 = vrot.slane %v410_v55, 4 }
 0x108   : > { %v297_v57 = vpop.permute.xlu2 %296 }
 0x109   : > { %v300_v62 = vrot.slane %v297_v57, 4 }
 0x10b   : > { %v302_v2 = vsel %vm258_vm0, %v300_v62, %v301_v63 }
 0x10c   : > { %v304_v5 = vsel %vm303_vm14, %v297_v57, %v302_v2 }
 0x10d   : > { %v306_v10 = vadd.f32 %v304_v5, %v261_v4 }
 0x110   : > { %v341_v56 = vpop.permute.xlu1 %340  ;;  %v374_v60 = vpop.permute.xlu2 %373 }
 0x111   : > { %v376_v58 = vpop.permute.xlu0 %375  ;;  %v343_v7 = vrot.slane %v341_v56, 4  ;;  %v377_v8 = vrot.slane %v374_v60, 4 }
 0x112   : > { %v378_v3 = vrot.slane %v376_v58, 4 }
 0x114   : > { %v379_v11 = vsel %vm258_vm0, %v377_v8, %v378_v3 }
 0x115   : > { %v381_v18 = vsel %vm380_vm1, %v374_v60, %v379_v11 }
 0x118   : > { %v478_v1 = vpop.permute.xlu2 %477 }
 0x119   : > { %v481_v22 = vrot.slane %v478_v1, 4 }
 0x11e   : > { %v445_v59 = vpop.permute.xlu1 %444 }
 0x11f   : > { %v447_v23 = vrot.slane %v445_v59, 4 }
 0x120   : > { %v515_v25 = vpop.permute.xlu2 %514 }
 0x121   : > { %v480_v61 = vpop.permute.xlu0 %479  ;;  %v517_v33 = vrot.slane %v515_v25, 4 }
 0x122   : > { %v482_v20 = vrot.slane %v480_v61, 4 }
 0x124   : > { %v483_v27 = vsel %vm258_vm0, %v481_v22, %v482_v20 }
 0x125   : > { %v485_v36 = vsel %vm484_vm4, %v478_v1, %v483_v27 }
 0x126   : > { %v408_v0 = vpop.permute.xlu1 %407 }
 0x127   : > { %v411_v12 = vrot.slane %v408_v0, 4 }
 0x128   : > { %v562_v49 = vpop.permute.xlu2 %561 }
 0x129   : > { %v339_v6 = vpop.permute.xlu0 %338  ;;  %v413_v45 = vsel %vm258_vm0, %v411_v12, %v412_v16 }
 0x12a   : > { %v342_v9 = vrot.slane %v339_v6, 4  ;;  %v415_v26 = vsel %vm414_vm2, %v408_v0, %v413_v45 }
 0x12c   : > { %v344_v13 = vsel %vm258_vm0, %v342_v9, %v343_v7 }
 0x12d   : > { %v346_v14 = vsel %vm345_vm15, %v339_v6, %v344_v13 }
 0x12e   : > { %v513_v15 = vpop.permute.xlu1 %512  ;;  %v348_v17 = vadd.f32 %v346_v14, %v306_v10 }
 0x12f   : > { %v516_v29 = vrot.slane %v513_v15, 4 }
 0x130   : > { %v383_v19 = vadd.f32 %v381_v18, %v348_v17 }
 0x131   : > { %v443_v21 = vpop.permute.xlu0 %442  ;;  %v518_v38 = vsel %vm258_vm0, %v516_v29, %v517_v33  ;;  %v605_v6 = vpop.permute.xlu2 %604 }
 0x132   : > { %v446_v24 = vrot.slane %v443_v21, 4  ;;  %v417_v30 = vadd.f32 %v415_v26, %v383_v19  ;;  %v520_v44 = vsel %vm519_vm5, %v513_v15, %v518_v38 }
 0x134   : > { %v448_v31 = vsel %vm258_vm0, %v446_v24, %v447_v23 }
 0x135   : > { %v450_v32 = vsel %vm449_vm3, %v443_v21, %v448_v31 }
 0x136   : > { %v452_v34 = vadd.f32 %v450_v32, %v417_v30  ;;  %v550_v37 = vpop.permute.xlu1 %549 }
 0x137   : > { %v552_v28 = vrot.slane %v550_v37, 4 }
 0x138   : > { %v487_v39 = vadd.f32 %v485_v36, %v452_v34 }
 0x139   : > { %v548_v42 = vpop.permute.xlu0 %547 }
 0x13a   : > { %v551_v43 = vrot.slane %v548_v42, 4  ;;  %v522_v46 = vadd.f32 %v520_v44, %v487_v39 }
 0x13c   : > { %v553_v47 = vsel %vm258_vm0, %v551_v43, %v552_v28 }
 0x13d   : > { %v555_v48 = vsel %vm554_vm6, %v548_v42, %v553_v47 }
 0x13e   : > { %v557_v35 = vadd.f32 %v555_v48, %v522_v46  ;;  %v591_v50 = vpop.permute.xlu1 %590 }
 0x140   : > { %v593_v51 = vperm.slane %v557_v35, 2  ;;  %v594_v52 = vperm.slane %v557_v35, 6  ;;  %v607_v53 = vperm.slane %v557_v35, 3  ;;  %v608_v40 = vperm.slane %v557_v35, 7 }
 0x141   : > { %v565_v54 = vperm.slane %v557_v35, 0  ;;  %v566_v41 = vperm.slane %v557_v35, 4  ;;  %v579_v55 = vperm.slane %v557_v35, 1  ;;  %v580_v56 = vperm.slane %v557_v35, 5  ;;  %v577_v59 = vpop.permute.xlu0 %576 }
 0x142   : > { %v597_v57 = vperm.slane %v593_v51, 2  ;;  %v598_v58 = vperm.slane %v594_v52, 2  ;;  %v611_v0 = vperm.slane %v607_v53, 3  ;;  %v612_v2 = vperm.slane %v608_v40, 3 }
 0x143   : > { %v569_v60 = vperm.slane %v565_v54, 0  ;;  %v570_v61 = vperm.slane %v566_v41, 0  ;;  %v583_v62 = vperm.slane %v579_v55, 1  ;;  %v584_v63 = vperm.slane %v580_v56, 1 }
 0x144   : > { %v599_v7 = vmul.f32 %v597_v57, %v591_v50  ;;  %v600_v8 = vmul.f32 %v598_v58, %v591_v50  ;;  %v613_v11 = vmul.f32 %v611_v0, %v605_v6  ;;  %v614_v12 = vmul.f32 %v612_v2, %v605_v6 }
 0x145   : > { %v571_v3 = vmul.f32 %v569_v60, %v562_v49  ;;  %v572_v4 = vmul.f32 %v570_v61, %v562_v49  ;;  %v585_v5 = vmul.f32 %v583_v62, %v577_v59  ;;  %v586_v1 = vmul.f32 %v584_v63, %v577_v59 }
 0x147   : > { %v587_v9 = vadd.f32 %v585_v5, %v571_v3  ;;  %v588_v10 = vadd.f32 %v586_v1, %v572_v4  ;;  %v621_v15 = vpop.permute.xlu1 %620 }
 0x149   : > { %v601_v13 = vadd.f32 %v599_v7, %v587_v9  ;;  %v602_v14 = vadd.f32 %v600_v8, %v588_v10 }
 0x14b   : > { %v615_v16 = vadd.f32 %v613_v11, %v601_v13  ;;  %v616_v17 = vadd.f32 %v614_v12, %v602_v14 }
 0x14d   : > { %v623_v18 = vadd.f32 %v621_v15, %v615_v16  ;;  %v624_v20 = vadd.f32 %v621_v15, %v616_v17 }
 0x14f   : > { %625 = vst [vmem:[%s217_s12] sm:$0xff] %v623_v18 }
 0x150   : > { %626 = vst [vmem:[%s217_s12 + $0x8] sm:$0xff] %v624_v20 }
 0x151   : > { %823 = shalt.err (!%p820_p3)
}
 0x152   : > { %727 = dma.vmem_to_hbm [thread:$0]  (%p950_p5), %s642_s22, 256, %s644_s13, %s628_s14  }
 0x153 PF: > { %p733_p4 = scmp.ge.s32.totalorder %s858_s21, 2  ;;  %s655_s16 = sand.u32 1, %s846_s18  }
 0x154   : > { %s656_s7 = scalar_lea.sflag [#allocation4], %s655_s16 }
 0x155   : > { %p730_p7 = pnand %p733_p4, %p954_p6 }
 0x157   : > { %p731_p8 = pneg %p730_p7 }
 0x159   : > { %841 = dma.done.wait (%p731_p8), %s656_s7, 256  }
 0x15a   : > { %843 = vsyncadd (%p731_p8), %s656_s7, 4294967040  ;;  %p15_p9 = scmp.ge.s32.totalorder %s937_s24, 4   ;;  %s1125_s18 = smov %s850_s19 }
 0x15b   : > { %s1126_s19 = smov %s854_s20  ;;  %s1127_s20 = smov %s948_s27 }
 0x15c   : > { %s1128_s21 = smov %s937_s24  ;;  %17 = sbr.rel (!%p15_p9) target bundleno = 3 (0x3), region = 85 }
 0x161   :  { %662 = vsyncpa [#allocation4], 1 }
 0x162   :  { %664 = vsyncpa [#allocation4 + $0x1], 1 }

</bundles_post_ra>
